<compile_context>
chip_gen: v6e
topology: v6e:2x2x1
jax: 0.10.0
libtpu: 0.0.40
codegen_flags: <defaults>
</compile_context>

<pallas_src>
import jax
import jax.numpy as jnp
from jax.experimental import pallas as pl
from jax.experimental.pallas import tpu as pltpu

D_IN, D_HID, D_LAT = 78, 60, 40
D_MID = D_LAT + D_HID            # fused [latent | decoder-pre-activation] width


def _autoencoder_kernel(x_ref,
                        w1e_ref, b1e_ref,
                        wmid_ref, bmid_ref,
                        w2d_ref, b2d_ref,
                        latent_ref, out_ref):
    cdt = w1e_ref.dtype                        # matmul-operand (compute) dtype
    x = x_ref[...].astype(cdt)                 # in-kernel cast, hidden under DMA

    # Encoder layer 1: 78 -> 60, tanh (f32 bias + EUP tanh).
    h = jnp.tanh(jnp.dot(x, w1e_ref[...],
                         preferred_element_type=jnp.float32) + b1e_ref[...])

    # Fused middle linears: single 60 -> 100 matmul -> [latent | d_pre].
    mid = jnp.dot(h.astype(cdt), wmid_ref[...],
                  preferred_element_type=jnp.float32) + bmid_ref[...]
    latent_ref[...] = mid[:, :D_LAT].astype(latent_ref.dtype)

    # Decoder layer 2: 60 -> 78.
    d = jnp.tanh(mid[:, D_LAT:])
    x_hat = jnp.dot(d.astype(cdt), w2d_ref[...],
                    preferred_element_type=jnp.float32) + b2d_ref[...]
    out_ref[...] = x_hat.astype(out_ref.dtype)


def gen_autoencoder_forward(x, params, *, tile_b=4096,
                            compute_dtype=jnp.bfloat16):
    """Fused autoencoder forward; returns the same dict structure as the
    PyTorch module."""
    batch = x.shape[0]
    out_dtype = x.dtype

    # Balanced batch tile: multiple of 8 sublanes, <= tile_b, sized so the
    # final (partial) block wastes as little work as possible.
    n_steps = pl.cdiv(batch, tile_b)
    tb = min(tile_b, ((pl.cdiv(batch, n_steps) + 7) // 8) * 8)
    grid = pl.cdiv(batch, tb)

    # Algebraic fusion of the two activation-free middle linears (done once,
    # in f32, on tiny 60x40 / 40x60 weights).
    w2e, w1d = params["enc_w2"], params["dec_w1"]
    b2e, b1d = params["enc_b2"], params["dec_b1"]
    w_mid = jnp.concatenate([w2e, w2e @ w1d], axis=1)            # (60, 100)
    b_mid = jnp.concatenate([b2e, b2e @ w1d + b1d], axis=1)      # (1, 100)

    w1e = params["enc_w1"].astype(compute_dtype)
    b1e = params["enc_b1"].astype(jnp.float32)
    wmid = w_mid.astype(compute_dtype)
    bmid = b_mid.astype(jnp.float32)
    w2d = params["dec_w2"].astype(compute_dtype)
    b2d = params["dec_b2"].astype(jnp.float32)

    # VMEM budget: double-buffered x tile + both output tiles + intermediates.
    x_bytes = tb * D_IN * x.dtype.itemsize
    out_bytes = tb * (D_LAT + D_IN) * jnp.dtype(out_dtype).itemsize
    per_step = x_bytes + out_bytes
    vmem_limit = int(min(max(3 * per_step + (4 << 20), 32 << 20), 48 << 20))

    batch_map = lambda i: (i, 0)
    const_map = lambda i: (0, 0)     # weights/biases: DMA'd once, stay resident

    latent, x_hat = pl.pallas_call(
        _autoencoder_kernel,
        grid=(grid,),
        out_shape=(
            jax.ShapeDtypeStruct((batch, D_LAT), out_dtype),
            jax.ShapeDtypeStruct((batch, D_IN), out_dtype),
        ),
        in_specs=[
            pl.BlockSpec((tb, D_IN), batch_map),       # x tile (native dtype)
            pl.BlockSpec((D_IN, D_HID), const_map),    # enc_w1
            pl.BlockSpec((1, D_HID), const_map),       # enc_b1
            pl.BlockSpec((D_HID, D_MID), const_map),   # fused mid weight
            pl.BlockSpec((1, D_MID), const_map),       # fused mid bias
            pl.BlockSpec((D_HID, D_IN), const_map),    # dec_w2
            pl.BlockSpec((1, D_IN), const_map),        # dec_b2
        ],
        out_specs=(
            pl.BlockSpec((tb, D_LAT), batch_map),
            pl.BlockSpec((tb, D_IN), batch_map),
        ),
        compiler_params=pltpu.CompilerParams(
            dimension_semantics=(pltpu.PARALLEL,),
            vmem_limit_bytes=vmem_limit),
    )(x, w1e, b1e, wmid, bmid, w2d, b2d)

    return {
        "x_input": x,
        "x_latent": {"latent": latent},
        "x_output": x_hat,
    }


def init_params(key):
    """Deterministic synthetic parameters (PyTorch Linear default init).
    Weights stored as (in_features, out_features)."""
    ks = jax.random.split(key, 8)

    def w(k, fan_in, fan_out):
        lim = 1.0 / jnp.sqrt(jnp.float32(fan_in))
        return jax.random.uniform(k, (fan_in, fan_out), jnp.float32, -lim, lim)

    def b(k, fan_in, fan_out):
        lim = 1.0 / jnp.sqrt(jnp.float32(fan_in))
        # bias kept 2-D (1, out) for lane-axis broadcasting
        return jax.random.uniform(k, (1, fan_out), jnp.float32, -lim, lim)

    return {
        "enc_w1": w(ks[0], 78, 60), "enc_b1": b(ks[1], 78, 60),
        "enc_w2": w(ks[2], 60, 40), "enc_b2": b(ks[3], 60, 40),
        "dec_w1": w(ks[4], 40, 60), "dec_b1": b(ks[5], 40, 60),
        "dec_w2": w(ks[6], 60, 78), "dec_b2": b(ks[7], 60, 78),
    }


def reference_forward(x, params):
    """Pure-JAX f32 reference matching the PyTorch module exactly."""
    h = jnp.tanh(x @ params["enc_w1"] + params["enc_b1"])
    latent = h @ params["enc_w2"] + params["enc_b2"]
    d = jnp.tanh(latent @ params["dec_w1"] + params["dec_b1"])
    x_hat = d @ params["dec_w2"] + params["dec_b2"]
    return latent, x_hat


if __name__ == "__main__":
    key = jax.random.PRNGKey(0)
    k_param, k_x = jax.random.split(key)
    params = init_params(k_param)

    batch = 8
    x = jax.random.normal(k_x, (batch, D_IN), jnp.float32)

    fwd = jax.jit(gen_autoencoder_forward)
    out = fwd(x, params)
    jax.block_until_ready(out)

    lat_ref, xhat_ref = reference_forward(x, params)
    assert out["x_input"].shape == (batch, D_IN)
    assert out["x_latent"]["latent"].shape == (batch, D_LAT)
    assert out["x_output"].shape == (batch, D_IN)
    # bf16 operands / f32 accumulation vs. pure-f32 reference.
    assert jnp.allclose(out["x_latent"]["latent"], lat_ref, atol=2e-2, rtol=2e-2)
    assert jnp.allclose(out["x_output"], xhat_ref, atol=2e-2, rtol=2e-2)

    # Ragged batch: exercises the partial final block (no wrapper pad/slice).
    x2 = jax.random.normal(jax.random.PRNGKey(3), (13, D_IN), jnp.float32)
    out2 = fwd(x2, params)
    jax.block_until_ready(out2)
    lat2_ref, xhat2_ref = reference_forward(x2, params)
    assert out2["x_latent"]["latent"].shape == (13, D_LAT)
    assert out2["x_output"].shape == (13, D_IN)
    assert jnp.allclose(out2["x_latent"]["latent"], lat2_ref, atol=2e-2, rtol=2e-2)
    assert jnp.allclose(out2["x_output"], xhat2_ref, atol=2e-2, rtol=2e-2)

    print("KERNEL_OK")
</pallas_src>

<mosaic_0001>
module attributes {stable_mosaic.version = 11 : i64} {
  func.func @_autoencoder_kernel(%arg0: i32, %arg1: memref<8x78xf32, #tpu.memory_space<vmem>>, %arg2: memref<78x60xbf16, #tpu.memory_space<vmem>>, %arg3: memref<1x60xf32, #tpu.memory_space<vmem>>, %arg4: memref<60x100xbf16, #tpu.memory_space<vmem>>, %arg5: memref<1x100xf32, #tpu.memory_space<vmem>>, %arg6: memref<60x78xbf16, #tpu.memory_space<vmem>>, %arg7: memref<1x78xf32, #tpu.memory_space<vmem>>, %arg8: memref<8x40xf32, #tpu.memory_space<vmem>>, %arg9: memref<8x78xf32, #tpu.memory_space<vmem>>) attributes {dimension_semantics = [#tpu.dimension_semantics<parallel>], iteration_bounds = array<i64: 1>, scalar_prefetch = 0 : i64, scratch_operands = 0 : i64, tpu.core_type = #tpu.core_type<tc>, window_params = [{transform_indices = @transform_0, window_bounds = array<i64: 8, 78>}, {pipeline_mode = #tpu.pipeline_mode<synchronous>, transform_indices = @transform_1, window_bounds = array<i64: 78, 60>}, {pipeline_mode = #tpu.pipeline_mode<synchronous>, transform_indices = @transform_2, window_bounds = array<i64: 1, 60>}, {pipeline_mode = #tpu.pipeline_mode<synchronous>, transform_indices = @transform_3, window_bounds = array<i64: 60, 100>}, {pipeline_mode = #tpu.pipeline_mode<synchronous>, transform_indices = @transform_4, window_bounds = array<i64: 1, 100>}, {pipeline_mode = #tpu.pipeline_mode<synchronous>, transform_indices = @transform_5, window_bounds = array<i64: 60, 78>}, {pipeline_mode = #tpu.pipeline_mode<synchronous>, transform_indices = @transform_6, window_bounds = array<i64: 1, 78>}, {transform_indices = @transform_7, window_bounds = array<i64: 8, 40>}, {transform_indices = @transform_8, window_bounds = array<i64: 8, 78>}]} {
    %c0 = arith.constant 0 : index
    %c0_0 = arith.constant 0 : index
    %0 = vector.load %arg1[%c0, %c0_0] : memref<8x78xf32, #tpu.memory_space<vmem>>, vector<8x78xf32>
    %1 = arith.truncf %0 : vector<8x78xf32> to vector<8x78xbf16>
    %c0_1 = arith.constant 0 : index
    %c0_2 = arith.constant 0 : index
    %2 = vector.load %arg2[%c0_1, %c0_2] : memref<78x60xbf16, #tpu.memory_space<vmem>>, vector<78x60xbf16>
    %cst = arith.constant dense<0.000000e+00> : vector<8x60xf32>
    %3 = tpu.matmul %1, %2, %cst {dimension_numbers = #tpu.dot_dimension_numbers<[1], [0], [0], [1], [0, 0, 1, 1], [], []>} : vector<8x78xbf16>, vector<78x60xbf16>, vector<8x60xf32> -> vector<8x60xf32>
    %c0_3 = arith.constant 0 : index
    %c0_4 = arith.constant 0 : index
    %4 = vector.load %arg3[%c0_3, %c0_4] : memref<1x60xf32, #tpu.memory_space<vmem>>, vector<1x60xf32>
    %5 = vector.broadcast %4 : vector<1x60xf32> to vector<8x60xf32>
    %6 = arith.addf %3, %5 : vector<8x60xf32>
    %7 = math.tanh %6 : vector<8x60xf32>
    %8 = arith.truncf %7 : vector<8x60xf32> to vector<8x60xbf16>
    %c0_5 = arith.constant 0 : index
    %c0_6 = arith.constant 0 : index
    %9 = vector.load %arg4[%c0_5, %c0_6] : memref<60x100xbf16, #tpu.memory_space<vmem>>, vector<60x100xbf16>
    %cst_7 = arith.constant dense<0.000000e+00> : vector<8x100xf32>
    %10 = tpu.matmul %8, %9, %cst_7 {dimension_numbers = #tpu.dot_dimension_numbers<[1], [0], [0], [1], [0, 0, 1, 1], [], []>} : vector<8x60xbf16>, vector<60x100xbf16>, vector<8x100xf32> -> vector<8x100xf32>
    %c0_8 = arith.constant 0 : index
    %c0_9 = arith.constant 0 : index
    %11 = vector.load %arg5[%c0_8, %c0_9] : memref<1x100xf32, #tpu.memory_space<vmem>>, vector<1x100xf32>
    %12 = vector.broadcast %11 : vector<1x100xf32> to vector<8x100xf32>
    %13 = arith.addf %10, %12 : vector<8x100xf32>
    %14 = vector.extract_strided_slice %13 {offsets = [0, 0], sizes = [8, 40], strides = [1, 1]} : vector<8x100xf32> to vector<8x40xf32>
    %c0_10 = arith.constant 0 : index
    %c0_11 = arith.constant 0 : index
    %15 = vector.load %arg8[%c0_10, %c0_11] : memref<8x40xf32, #tpu.memory_space<vmem>>, vector<8x40xf32>
    tpu.vector_store %arg8[%c0_10, %c0_11], %14 {strides = array<i32>} : memref<8x40xf32, #tpu.memory_space<vmem>>, vector<8x40xf32>,
    %16 = vector.extract_strided_slice %13 {offsets = [0, 40], sizes = [8, 60], strides = [1, 1]} : vector<8x100xf32> to vector<8x60xf32>
    %17 = math.tanh %16 : vector<8x60xf32>
    %18 = arith.truncf %17 : vector<8x60xf32> to vector<8x60xbf16>
    %c0_12 = arith.constant 0 : index
    %c0_13 = arith.constant 0 : index
    %19 = vector.load %arg6[%c0_12, %c0_13] : memref<60x78xbf16, #tpu.memory_space<vmem>>, vector<60x78xbf16>
    %cst_14 = arith.constant dense<0.000000e+00> : vector<8x78xf32>
    %20 = tpu.matmul %18, %19, %cst_14 {dimension_numbers = #tpu.dot_dimension_numbers<[1], [0], [0], [1], [0, 0, 1, 1], [], []>} : vector<8x60xbf16>, vector<60x78xbf16>, vector<8x78xf32> -> vector<8x78xf32>
    %c0_15 = arith.constant 0 : index
    %c0_16 = arith.constant 0 : index
    %21 = vector.load %arg7[%c0_15, %c0_16] : memref<1x78xf32, #tpu.memory_space<vmem>>, vector<1x78xf32>
    %22 = vector.broadcast %21 : vector<1x78xf32> to vector<8x78xf32>
    %23 = arith.addf %20, %22 : vector<8x78xf32>
    %c0_17 = arith.constant 0 : index
    %c0_18 = arith.constant 0 : index
    %24 = vector.load %arg9[%c0_17, %c0_18] : memref<8x78xf32, #tpu.memory_space<vmem>>, vector<8x78xf32>
    tpu.vector_store %arg9[%c0_17, %c0_18], %23 {strides = array<i32>} : memref<8x78xf32, #tpu.memory_space<vmem>>, vector<8x78xf32>,
    return
  }
  func.func @transform_0(%arg0: i32) -> (i32, i32) {
    %c0_i32 = arith.constant 0 : i32
    %c0_i32_0 = arith.constant 0 : i32
    return %arg0, %c0_i32 : i32, i32
  }
  func.func @transform_1(%arg0: i32) -> (i32, i32) {
    %c0_i32 = arith.constant 0 : i32
    %c0_i32_0 = arith.constant 0 : i32
    %c0_i32_1 = arith.constant 0 : i32
    return %c0_i32, %c0_i32_0 : i32, i32
  }
  func.func @transform_2(%arg0: i32) -> (i32, i32) {
    %c0_i32 = arith.constant 0 : i32
    %c0_i32_0 = arith.constant 0 : i32
    %c0_i32_1 = arith.constant 0 : i32
    return %c0_i32, %c0_i32_0 : i32, i32
  }
  func.func @transform_3(%arg0: i32) -> (i32, i32) {
    %c0_i32 = arith.constant 0 : i32
    %c0_i32_0 = arith.constant 0 : i32
    %c0_i32_1 = arith.constant 0 : i32
    return %c0_i32, %c0_i32_0 : i32, i32
  }
  func.func @transform_4(%arg0: i32) -> (i32, i32) {
    %c0_i32 = arith.constant 0 : i32
    %c0_i32_0 = arith.constant 0 : i32
    %c0_i32_1 = arith.constant 0 : i32
    return %c0_i32, %c0_i32_0 : i32, i32
  }
  func.func @transform_5(%arg0: i32) -> (i32, i32) {
    %c0_i32 = arith.constant 0 : i32
    %c0_i32_0 = arith.constant 0 : i32
    %c0_i32_1 = arith.constant 0 : i32
    return %c0_i32, %c0_i32_0 : i32, i32
  }
  func.func @transform_6(%arg0: i32) -> (i32, i32) {
    %c0_i32 = arith.constant 0 : i32
    %c0_i32_0 = arith.constant 0 : i32
    %c0_i32_1 = arith.constant 0 : i32
    return %c0_i32, %c0_i32_0 : i32, i32
  }
  func.func @transform_7(%arg0: i32) -> (i32, i32) {
    %c0_i32 = arith.constant 0 : i32
    %c0_i32_0 = arith.constant 0 : i32
    return %arg0, %c0_i32 : i32, i32
  }
  func.func @transform_8(%arg0: i32) -> (i32, i32) {
    %c0_i32 = arith.constant 0 : i32
    %c0_i32_0 = arith.constant 0 : i32
    return %arg0, %c0_i32 : i32, i32
  }
}

</mosaic_0001>

<bundles_post_ra>
// kernel: gen_autoencoder_forward.1
= control target key start
LH: loop header
LB: loop body
LE: loop exit
PB: predicated region body
PF: predicated region fallthrough
CT: control target
= control target key end

     0   :  { %14 = vsyncpa [#allocation3], 0  ;;  %vm83_vm0 = vcmask 1046528   ;;  %v474_v0 = vmov 0.0   ;;  %vm475_vm1 = vmmov 0   ;;  %s590_s0 = inlined_call_operand.vmem [shape: f32[8,78], index: 0, kind: input, shape index: {}]   ;;  %s591_s1 = inlined_call_operand.vmem [shape: bf16[78,60], index: 1, kind: input, shape index: {}]   ;;  %s592_s2 = inlined_call_operand.vmem [shape: f32[1,60], index: 2, kind: input, shape index: {}]   ;;  %s593_s3 = inlined_call_operand.vmem [shape: bf16[60,100], index: 3, kind: input, shape index: {}]   ;;  %s594_s4 = inlined_call_operand.vmem [shape: f32[1,100], index: 4, kind: input, shape index: {}]   ;;  %s595_s5 = inlined_call_operand.vmem [shape: bf16[60,78], index: 5, kind: input, shape index: {}]   ;;  %s596_s6 = inlined_call_operand.vmem [shape: f32[1,78], index: 6, kind: input, shape index: {}]   ;;  %s597_s7 = inlined_call_operand.hbm [shape: f32[8,40], index: 7, kind: output, shape index: {0}]   ;;  %s598_s8 = inlined_call_operand.hbm [shape: f32[8,78], index: 8, kind: output, shape index: {1}]  }
   0x1   :  { %370 = vmatprep.subr.bf16.mxu0 %v474_v0  ;;  %v413_v1 = vld [vmem:[%s591_s1 + $0x20] sm:$0x7f]   ;;  %384 = vmatprep.subr.bf16.mxu1 %v474_v0  ;;  %v414_v3 = vld [vmem:[%s591_s1 + $0x18] sm:$0xff]   ;;  %v415_v4 = vld [vmem:[%s591_s1 + $0x10] sm:$0xff]  }
   0x2   :  { %v85_v2 = vsel %vm83_vm0, %v413_v1, 0  ;;  %380 = vmatprep.mubr.msk.bf16.mxu0 %vm475_vm1, %v474_v0  ;;  %392 = vmatprep.mubr.msk.bf16.mxu1 %vm475_vm1, %v474_v0 }
   0x3   :  { %371 = vmatpush3.bf16.msra.mxu0 %v85_v2 }
   0x4   :  { %372 = vmatprep.subr.bf16.mxu0 %v474_v0 }
   0x7   :  { %373 = vmatpush3.bf16.msra.mxu0 %v414_v3 }
   0x8   :  { %374 = vmatprep.subr.bf16.mxu0 %v474_v0 }
   0x9   :  { %15 = vsyncpa [#allocation5], 0  ;;  %v416_v5 = vld [vmem:[%s591_s1 + $0x8] sm:$0xff]   ;;  %v417_v6 = vld [vmem:[%s591_s1] sm:$0xff]   ;;  %vm79_vm2 = vcmask 637952   ;;  %vm171_vm3 = vcmask 1045504  }
   0xa   :  { %v31_v7 = vld [vmem:[%s590_s0] sm:$0xff]  ;;  %v418_v9 = vld [vmem:[%s593_s3 + $0x18] sm:$0x3f]   ;;  %v420_v11 = vld [vmem:[%s593_s3 + $0x10] sm:$0xff]   ;;  %vm167_vm4 = vcmask 490496   ;;  %vm215_vm5 = vcmask 326656  }
   0xb   :  { %375 = vmatpush3.bf16.msra.mxu0 %v415_v4  ;;  %v32_v8 = vpack.c.bf16 %v31_v7, %v31_v7  ;;  %v173_v10 = vsel %vm171_vm3, %v418_v9, 0  ;;  %v421_v12 = vld [vmem:[%s593_s3 + $0x8] sm:$0xff]   ;;  %v422_v13 = vld [vmem:[%s593_s3] sm:$0xff]   ;;  %v419_v20 = vld [vmem:[%s595_s5 + $0x18] sm:$0x3f]   ;;  %s476_s11 = smov 88  }
   0xc   :  { %376 = vmatprep.subr.bf16.mxu0 %v474_v0  ;;  %385 = vmatpush3.bf16.msra.mxu1 %v173_v10  ;;  %v335_v14 = vld [vmem:[%s592_s2] ss:$0 sm:$0xff]  ;;  %v264_v23 = vsel %vm171_vm3, %v419_v20, 0  ;;  %v423_v24 = vld [vmem:[%s595_s5 + $0x10] sm:$0xff]   ;;  %v424_v25 = vld [vmem:[%s595_s5 + $0x8] sm:$0xff]  }
   0xd   :  { %386 = vmatprep.subr.bf16.mxu1 %v474_v0  ;;  %v425_v26 = vld [vmem:[%s595_s5] sm:$0xff]   ;;  %s477_s5 = smov [#allocation2]  }
   0xe   :  { %v342_v27 = vld [vmem:[%s594_s4] ss:$0 sm:$0xff]  ;;  %s313_s12 = sshll.u32 %s477_s5, 4  ;;  %s314_s12 = int_to_ptr.vmem [resolvable:$true] %s313_s12 }
   0xf   :  { %377 = vmatpush3.bf16.msra.mxu0 %v416_v5  ;;  %s430_s13 = scalar_lea.vmem %s314_s12, 128  ;;  %p435_p1 = scmp.lt.s32.totalorder %s314_s12, %s314_s12 }
  0x10   :  { %378 = vmatprep.subr.bf16.mxu0 %v474_v0  ;;  %387 = vmatpush3.bf16.msra.mxu1 %v420_v11  ;;  %p431_p0 = scmp.ne.s32.totalorder %s314_s12, %s430_s13  ;;  %p436_p2 = scmp.lt.s32.totalorder %s430_s13, %s430_s13 }
  0x11   :  { %388 = vmatprep.subr.bf16.mxu1 %v474_v0 }
  0x12   :  { %p437_p3 = por %p436_p2, %p435_p1 }
  0x13   :  { %379 = vmatpush3.bf16.msra.mxu0 %v417_v6 }
  0x14   :  { %389 = vmatpush3.bf16.msra.mxu1 %v421_v12  ;;  %p438_p4 = pnand %p437_p3, %p431_p0 }
  0x15   :  { %390 = vmatprep.subr.bf16.mxu1 %v474_v0 }
  0x16   :  { %381 = vmatmul.mubr.msk.bf16.vlgmr.msra.gmra.mxu0 %vm79_vm2, %v32_v8 }
  0x18   :  { %391 = vmatpush3.bf16.msra.mxu1 %v422_v13 }
  0x19   :  { %396 = vmatprep.subr.bf16.mxu1 %v474_v0 }
  0xd6   :  { %v121_v15 = vpop.f32.mrf.mxu0 }
  0xd7   :  { %v122_v16 = vadd.f32 %v335_v14, %v121_v15 }
  0xd8   :  { %v382_v17 = vpop.f32.mrf.mxu0 }
  0xd9   :  { %426 = vtanh.f32 %v122_v16 }
  0xda   :  { %v124_v18 = vpop.f32.mrf.mxu0 }
  0xdc   :  { %v383_v19 = vpop.f32.mrf.mxu0 }
  0xe6   :  { %v427_v21 = vpop.eup %426 }
  0xe7   :  { %v128_v22 = vpack.c.bf16 %v427_v21, %v427_v21 }
  0xe9   :  { %393 = vmatmul.mubr.msk.bf16.vlgmr.msra.gmra.mxu1 %vm167_vm4, %v128_v22 }
  0xea   :  { %397 = vmatpush3.bf16.msra.mxu1 %v264_v23  ;;  %404 = vmatprep.mubr.msk.bf16.mxu1 %vm475_vm1, %v474_v0 }
  0xeb   :  { %398 = vmatprep.subr.bf16.mxu1 %v474_v0 }
  0xee   :  { %399 = vmatpush3.bf16.msra.mxu1 %v423_v24 }
  0xef   :  { %400 = vmatprep.subr.bf16.mxu1 %v474_v0 }
  0xf2   :  { %401 = vmatpush3.bf16.msra.mxu1 %v424_v25 }
  0xf3   :  { %402 = vmatprep.subr.bf16.mxu1 %v474_v0 }
  0xf6   :  { %403 = vmatpush3.bf16.msra.mxu1 %v425_v26 }
 0x1a9   :  { %v209_v28 = vpop.f32.mrf.mxu1 }
 0x1aa   :  { %v210_v29 = vadd.f32 %v342_v27, %v209_v28 }
 0x1ab   :  { %v394_v30 = vpop.f32.mrf.mxu1 }
 0x1ac   :  { %428 = vtanh.f32 %v210_v29  ;;  %216 = vst.msk [vmem:[#allocation2] sm:$0xff] %vm215_vm5, %v210_v29 }
 0x1ad   :  { %v212_v31 = vpop.f32.mrf.mxu1 }
 0x1af   :  { %v395_v32 = vpop.f32.mrf.mxu1 }
 0x1b9   :  { %v429_v33 = vpop.eup %428 }
 0x1ba   :  { %v218_v34 = vpack.c.bf16 %v429_v33, %v429_v33 }
 0x1bc   :  { %235 = vrot.lane.b32.xlu0 %v218_v34, %s476_s11 }
 0x22e   :  { %v236_v35 = vpop.permute.xlu0 %235 }
 0x22f   :  { %405 = vmatmul.mubr.msk.bf16.vlgmr.msra.gmra.mxu1 %vm167_vm4, %v236_v35 }
 0x230   :  { %441 = shalt.err (!%p438_p4)
}
 0x231   :  { %316 = dma.vmem_to_hbm [thread:$0]  %s314_s12, 128, %s597_s7, [#allocation3]   ;;  %v348_v36 = vld [vmem:[%s596_s6] ss:$0 sm:$0xff] }
 0x232   :  { %s478_s17 = smov [#allocation4]  }
 0x233   :  { %s323_s18 = sshll.u32 %s478_s17, 4  ;;  %s324_s18 = int_to_ptr.vmem [resolvable:$true] %s323_s18 }
 0x234   :  { %s450_s1 = scalar_lea.vmem %s324_s18, 128  ;;  %p455_p6 = scmp.lt.s32.totalorder %s324_s18, %s324_s18 }
 0x235   :  { %p451_p5 = scmp.ne.s32.totalorder %s324_s18, %s450_s1  ;;  %p456_p7 = scmp.lt.s32.totalorder %s450_s1, %s450_s1 }
 0x237   :  { %p457_p8 = por %p456_p7, %p455_p6 }
 0x239   :  { %p458_p9 = pnand %p457_p8, %p451_p5 }
 0x2ef   :  { %v300_v37 = vpop.f32.mrf.mxu1 }
 0x2f0   :  { %v301_v38 = vadd.f32 %v348_v36, %v300_v37 }
 0x2f1   :  { %v406_v39 = vpop.f32.mrf.mxu1 }
 0x2f2   :  { %306 = vst.msk [vmem:[#allocation4] sm:$0xff] %vm79_vm2, %v301_v38 }
 0x2f3   :  { %v303_v40 = vpop.f32.mrf.mxu1 }
 0x2f4   :  { %461 = shalt.err (!%p458_p9)
}
 0x2f5   :  { %326 = dma.vmem_to_hbm [thread:$0]  %s324_s18, 128, %s598_s8, [#allocation5]   ;;  %v407_v41 = vpop.f32.mrf.mxu1 }
 0x2f6   :  { %470 = dma.done.wait [#allocation3], 128  }
 0x2f7   :  { %471 = vsyncadd [#allocation3], 4294967168 }
 0x2f8   :  { %472 = dma.done.wait [#allocation5], 128  }
 0x2f9   :  { %473 = vsyncadd [#allocation5], 4294967168 }
 0x2fa   :  { %333 = vsyncpa [#allocation3], 1 }
 0x2fb   :  { %334 = vsyncpa [#allocation5], 1 }

</bundles_post_ra>
